<compile_context>
chip_gen: v5e
topology: v5e:2x2
jax: 0.10.0
libtpu: 0.0.40
codegen_flags: <defaults>
</compile_context>

<pallas_src>
from functools import partial

import jax
import jax.numpy as jnp
from jax.experimental import pallas as pl
from jax.experimental.pallas import tpu as pltpu


# ----------------------------------------------------------------------------
# In-kernel conv core: "same"-padded conv as KH lane-folded GEMMs.
#   x_ref  : (N, H, W*Cin)            unpadded, lane-folded input
#   m_ref  : (KH, W*Cin, W*Cout)      block-Toeplitz weights (zero band = W padding)
#   xp_ref : (N, H+2*ph, W*Cin) VMEM  scratch for in-kernel H zero-padding
# returns y : (N*H, W*Cout) f32, lane-dense (lanes = (w, cout))
# ----------------------------------------------------------------------------
def _conv_core(x_ref, m_ref, xp_ref, *, N, H, W, Cin, KH, ph):
    WCin = W * Cin
    rows = N * H

    # H zero-padding done once in VMEM (W padding lives inside the Toeplitz weights).
    xp_ref[...] = jnp.zeros_like(xp_ref)
    xp_ref[:, ph:ph + H, :] = x_ref[...]

    y = None
    for kh in range(KH):                              # static unroll (KH = 3)
        xk = xp_ref[:, kh:kh + H, :].reshape(rows, WCin)
        t = jnp.dot(xk, m_ref[kh], preferred_element_type=jnp.float32)
        y = t if y is None else y + t
    return y


# ----------------------------------------------------------------------------
# Fused conv + training-mode BatchNorm2d kernel (bn=True specialization).
#   r_ref  : (W*Cout, Cout)   0/1 matrix: folded-lane -> per-channel reduce
#   rt_ref : (Cout, W*Cout)   0/1 matrix: per-channel -> folded-lane broadcast
#   g_ref  : (1, Cout)        BN gamma
#   bl_ref : (1, W*Cout)      BN beta tiled onto the (w, c) lane layout
#   o_ref  : (N*H, W*Cout)    lane-dense output
# ----------------------------------------------------------------------------
def _conv_bn_kernel(x_ref, m_ref, r_ref, rt_ref, g_ref, bl_ref, o_ref, xp_ref, *,
                    N, H, W, Cin, Cout, KH, ph, eps):
    y = _conv_core(x_ref, m_ref, xp_ref, N=N, H=H, W=W, Cin=Cin, KH=KH, ph=ph)

    # Training-mode BatchNorm2d: biased variance over (N, H, W) per channel,
    # centered two-pass.  Conv bias is omitted: it cancels exactly here.
    inv_cnt = 1.0 / float(N * H * W)
    s_lanes = jnp.sum(y, axis=0, keepdims=True)                          # (1, W*Cout)
    mean_ch = jnp.dot(s_lanes, r_ref[...],
                      preferred_element_type=jnp.float32) * inv_cnt      # (1, Cout)
    mean_lanes = jnp.dot(mean_ch, rt_ref[...],
                         preferred_element_type=jnp.float32)             # (1, W*Cout)
    d = y - mean_lanes
    ss_lanes = jnp.sum(d * d, axis=0, keepdims=True)                     # (1, W*Cout)
    var_ch = jnp.dot(ss_lanes, r_ref[...],
                     preferred_element_type=jnp.float32) * inv_cnt       # (1, Cout)
    scale_ch = g_ref[...] * jax.lax.rsqrt(var_ch + eps)                  # EUP rsqrt
    scale_lanes = jnp.dot(scale_ch, rt_ref[...],
                          preferred_element_type=jnp.float32)            # (1, W*Cout)
    o_ref[...] = (d * scale_lanes + bl_ref[...]).astype(o_ref.dtype)


# ----------------------------------------------------------------------------
# Conv + bias kernel (bn=False specialization; no unused operands).
#   b_ref : (1, W*Cout)  conv bias tiled onto the (w, c) lane layout
# ----------------------------------------------------------------------------
def _conv_bias_kernel(x_ref, m_ref, b_ref, o_ref, xp_ref, *,
                      N, H, W, Cin, KH, ph):
    y = _conv_core(x_ref, m_ref, xp_ref, N=N, H=H, W=W, Cin=Cin, KH=KH, ph=ph)
    o_ref[...] = (y + b_ref[...]).astype(o_ref.dtype)


# ----------------------------------------------------------------------------
# One-time parameter transform.  Do this at parameter-load time, NOT per forward.
# ----------------------------------------------------------------------------
def prepare_basic_conv2d_params(w_oihw, bias, gamma, beta, *, W, bn,
                                dtype=jnp.float32):
    Cout, Cin, KH, KW = w_oihw.shape
    assert KH % 2 == 1 and KW % 2 == 1, \
        "padding = kernel_size // 2 matches PyTorch 'same' only for odd kernels"
    pw = KW // 2

    # Block-Toeplitz weights over the folded lane axes:
    #   M[kh, win*Cin+ci, wout*Cout+co] = w[co, ci, kh, win-wout+pw]  (0 outside band)
    # The zero band implements the left/right zero padding along W for free.
    wk = jnp.transpose(w_oihw, (2, 3, 1, 0)).astype(dtype)          # (KH, KW, Cin, Cout)
    wo = jnp.arange(W)
    kw = jnp.arange(KW)
    wi = jnp.arange(W)
    sel = (wi[None, :, None] ==
           wo[None, None, :] + kw[:, None, None] - pw).astype(dtype)  # (KW, W, W)
    M = jnp.einsum('xab,hxic->haibc', sel, wk).reshape(KH, W * Cin, W * Cout)

    if bn:
        if gamma is None:
            gamma = jnp.ones((Cout,), dtype)
        if beta is None:
            beta = jnp.zeros((Cout,), dtype)
        R = jnp.tile(jnp.eye(Cout, dtype=dtype), (W, 1))     # (W*Cout, Cout)  reduce
        RT = jnp.transpose(R)                                # (Cout, W*Cout)  broadcast
        g2 = gamma.reshape(1, Cout).astype(dtype)
        beta_lanes = jnp.tile(beta.astype(dtype), W).reshape(1, W * Cout)
        return (M, R, RT, g2, beta_lanes)

    bias_lanes = jnp.tile(bias.astype(dtype), W).reshape(1, W * Cout)
    return (M, bias_lanes)


# ----------------------------------------------------------------------------
# Lane-folded entry point (the real hot path): x_folded is (N, H, W*Cin) NHWC-folded.
# ----------------------------------------------------------------------------
def basic_conv2d_folded(x_folded, params, *, N, H, W, Cin, Cout, KH, bn, eps=1e-5):
    ph = KH // 2
    WCin, WCout = W * Cin, W * Cout
    out_shape = jax.ShapeDtypeStruct((N * H, WCout), jnp.float32)
    scratch_shapes = [pltpu.VMEM((N, H + 2 * ph, WCin), jnp.float32)]
    cparams = pltpu.CompilerParams(dimension_semantics=("arbitrary",))

    if bn:
        M, R, RT, g2, beta_lanes = params
        kernel = partial(_conv_bn_kernel, N=N, H=H, W=W, Cin=Cin, Cout=Cout,
                         KH=KH, ph=ph, eps=eps)
        return pl.pallas_call(
            kernel,
            out_shape=out_shape,
            grid=(1,),
            in_specs=[
                pl.BlockSpec((N, H, WCin), lambda i: (0, 0, 0)),
                pl.BlockSpec((KH, WCin, WCout), lambda i: (0, 0, 0)),
                pl.BlockSpec((WCout, Cout), lambda i: (0, 0)),
                pl.BlockSpec((Cout, WCout), lambda i: (0, 0)),
                pl.BlockSpec((1, Cout), lambda i: (0, 0)),
                pl.BlockSpec((1, WCout), lambda i: (0, 0)),
            ],
            out_specs=pl.BlockSpec((N * H, WCout), lambda i: (0, 0)),
            scratch_shapes=scratch_shapes,
            compiler_params=cparams,
        )(x_folded, M, R, RT, g2, beta_lanes)

    M, bias_lanes = params
    kernel = partial(_conv_bias_kernel, N=N, H=H, W=W, Cin=Cin, KH=KH, ph=ph)
    return pl.pallas_call(
        kernel,
        out_shape=out_shape,
        grid=(1,),
        in_specs=[
            pl.BlockSpec((N, H, WCin), lambda i: (0, 0, 0)),
            pl.BlockSpec((KH, WCin, WCout), lambda i: (0, 0, 0)),
            pl.BlockSpec((1, WCout), lambda i: (0, 0)),
        ],
        out_specs=pl.BlockSpec((N * H, WCout), lambda i: (0, 0)),
        scratch_shapes=scratch_shapes,
        compiler_params=cparams,
    )(x_folded, M, bias_lanes)


# ----------------------------------------------------------------------------
# PyTorch-interface convenience wrapper (NCHW in / NCHW out).
# The transposes here are interface plumbing only; a real model should keep
# activations NHWC(-folded) end to end and call basic_conv2d_folded directly,
# with prepare_basic_conv2d_params() run once at parameter-load time.
# ----------------------------------------------------------------------------
def basic_conv2d(x_nchw, w_oihw, bias, gamma=None, beta=None, *, bn=True, eps=1e-5):
    N, Cin, H, W = x_nchw.shape
    Cout, Cin2, KH, KW = w_oihw.shape
    assert Cin == Cin2
    params = prepare_basic_conv2d_params(w_oihw, bias, gamma, beta, W=W, bn=bn)
    x_folded = jnp.transpose(x_nchw, (0, 2, 3, 1)).reshape(N, H, W * Cin)
    x_folded = x_folded.astype(jnp.float32)
    out2d = basic_conv2d_folded(x_folded, params, N=N, H=H, W=W, Cin=Cin,
                                Cout=Cout, KH=KH, bn=bn, eps=eps)
    return jnp.transpose(out2d.reshape(N, H, W, Cout), (0, 3, 1, 2))


# ----------------------------------------------------------------------------
# Pure-JAX reference (correctness check).
# ----------------------------------------------------------------------------
def _reference(x_nchw, w_oihw, bias, gamma, beta, *, bn=True, eps=1e-5):
    KH, KW = w_oihw.shape[2], w_oihw.shape[3]
    y = jax.lax.conv_general_dilated(
        x_nchw, w_oihw, window_strides=(1, 1),
        padding=[(KH // 2, KH // 2), (KW // 2, KW // 2)],
        dimension_numbers=("NCHW", "OIHW", "NCHW"),
    ) + bias[None, :, None, None]
    if bn:
        mean = jnp.mean(y, axis=(0, 2, 3), keepdims=True)
        var = jnp.mean((y - mean) ** 2, axis=(0, 2, 3), keepdims=True)
        y = (y - mean) / jnp.sqrt(var + eps)
        y = y * gamma[None, :, None, None] + beta[None, :, None, None]
    return y


if __name__ == "__main__":
    # Module config: BasicConv2d(input_dim=4, output_dim=8, kernel_size=(3,3), bn=True)
    N, Cin, H, W = 2, 4, 16, 16
    Cout, KH, KW = 8, 3, 3

    key = jax.random.PRNGKey(0)
    kx, kw_, kb, kg, kbe = jax.random.split(key, 5)
    x = jax.random.normal(kx, (N, Cin, H, W), jnp.float32)
    w = jax.random.normal(kw_, (Cout, Cin, KH, KW), jnp.float32) * 0.1
    bias = jax.random.normal(kb, (Cout,), jnp.float32) * 0.1
    gamma = 1.0 + 0.1 * jax.random.normal(kg, (Cout,), jnp.float32)
    beta = 0.1 * jax.random.normal(kbe, (Cout,), jnp.float32)

    # bn=True path (module default in the test config)
    out = basic_conv2d(x, w, bias, gamma, beta, bn=True)
    out = jax.block_until_ready(out)
    ref = _reference(x, w, bias, gamma, beta, bn=True)
    assert out.shape == (N, Cout, H, W)
    assert jnp.allclose(out, ref, rtol=1e-3, atol=1e-3), "mismatch vs reference (bn=True)"

    # bn=False path
    out_nobn = basic_conv2d(x, w, bias, bn=False)
    out_nobn = jax.block_until_ready(out_nobn)
    ref_nobn = _reference(x, w, bias, gamma, beta, bn=False)
    assert jnp.allclose(out_nobn, ref_nobn, rtol=1e-3, atol=1e-3), \
        "mismatch vs reference (bn=False)"

    print("KERNEL_OK")
</pallas_src>

<mosaic_0001>
module attributes {stable_mosaic.version = 11 : i64} {
  func.func @_conv_bn_kernel(%arg0: i32, %arg1: memref<2x16x64xf32, #tpu.memory_space<vmem>>, %arg2: memref<3x64x128xf32, #tpu.memory_space<vmem>>, %arg3: memref<128x8xf32, #tpu.memory_space<vmem>>, %arg4: memref<8x128xf32, #tpu.memory_space<vmem>>, %arg5: memref<1x8xf32, #tpu.memory_space<vmem>>, %arg6: memref<1x128xf32, #tpu.memory_space<vmem>>, %arg7: memref<32x128xf32, #tpu.memory_space<vmem>>, %arg8: memref<2x18x64xf32, #tpu.memory_space<vmem>>) attributes {dimension_semantics = [#tpu.dimension_semantics<arbitrary>], iteration_bounds = array<i64: 1>, scalar_prefetch = 0 : i64, scratch_operands = 1 : i64, tpu.core_type = #tpu.core_type<tc>, window_params = [{pipeline_mode = #tpu.pipeline_mode<synchronous>, transform_indices = @transform_0, window_bounds = array<i64: 2, 16, 64>}, {pipeline_mode = #tpu.pipeline_mode<synchronous>, transform_indices = @transform_1, window_bounds = array<i64: 3, 64, 128>}, {pipeline_mode = #tpu.pipeline_mode<synchronous>, transform_indices = @transform_2, window_bounds = array<i64: 128, 8>}, {pipeline_mode = #tpu.pipeline_mode<synchronous>, transform_indices = @transform_3, window_bounds = array<i64: 8, 128>}, {pipeline_mode = #tpu.pipeline_mode<synchronous>, transform_indices = @transform_4, window_bounds = array<i64: 1, 8>}, {pipeline_mode = #tpu.pipeline_mode<synchronous>, transform_indices = @transform_5, window_bounds = array<i64: 1, 128>}, {pipeline_mode = #tpu.pipeline_mode<synchronous>, transform_indices = @transform_6, window_bounds = array<i64: 32, 128>}]} {
    %cst = arith.constant 0.000000e+00 : f32
    %0 = vector.broadcast %cst : f32 to vector<2x18x64xf32>
    %c0 = arith.constant 0 : index
    %c0_0 = arith.constant 0 : index
    %c0_1 = arith.constant 0 : index
    %1 = vector.load %arg8[%c0, %c0_0, %c0_1] : memref<2x18x64xf32, #tpu.memory_space<vmem>>, vector<2x18x64xf32>
    tpu.vector_store %arg8[%c0, %c0_0, %c0_1], %0 {strides = array<i32>} : memref<2x18x64xf32, #tpu.memory_space<vmem>>, vector<2x18x64xf32>,
    %c0_2 = arith.constant 0 : index
    %c0_3 = arith.constant 0 : index
    %c0_4 = arith.constant 0 : index
    %2 = vector.load %arg1[%c0_2, %c0_3, %c0_4] : memref<2x16x64xf32, #tpu.memory_space<vmem>>, vector<2x16x64xf32>
    %c0_5 = arith.constant 0 : index
    %c1 = arith.constant 1 : index
    %c0_6 = arith.constant 0 : index
    %3 = vector.load %arg8[%c0_5, %c1, %c0_6] : memref<2x18x64xf32, #tpu.memory_space<vmem>>, vector<2x16x64xf32>
    tpu.vector_store %arg8[%c0_5, %c1, %c0_6], %2 {strides = array<i32>} : memref<2x18x64xf32, #tpu.memory_space<vmem>>, vector<2x16x64xf32>,
    %c0_7 = arith.constant 0 : index
    %c0_8 = arith.constant 0 : index
    %c0_9 = arith.constant 0 : index
    %4 = vector.load %arg8[%c0_7, %c0_8, %c0_9] : memref<2x18x64xf32, #tpu.memory_space<vmem>>, vector<2x16x64xf32>
    %5 = vector.shape_cast %4 : vector<2x16x64xf32> to vector<32x64xf32>
    %c0_10 = arith.constant 0 : index
    %c0_11 = arith.constant 0 : index
    %c0_12 = arith.constant 0 : index
    %6 = vector.load %arg2[%c0_10, %c0_11, %c0_12] : memref<3x64x128xf32, #tpu.memory_space<vmem>>, vector<1x64x128xf32>
    %7 = vector.shape_cast %6 : vector<1x64x128xf32> to vector<64x128xf32>
    %cst_13 = arith.constant dense<0.000000e+00> : vector<32x128xf32>
    %8 = tpu.matmul %5, %7, %cst_13 {dimension_numbers = #tpu.dot_dimension_numbers<[1], [0], [0], [1], [0, 0, 1, 1], [], []>} : vector<32x64xf32>, vector<64x128xf32>, vector<32x128xf32> -> vector<32x128xf32>
    %c0_14 = arith.constant 0 : index
    %c1_15 = arith.constant 1 : index
    %c0_16 = arith.constant 0 : index
    %9 = vector.load %arg8[%c0_14, %c1_15, %c0_16] : memref<2x18x64xf32, #tpu.memory_space<vmem>>, vector<2x16x64xf32>
    %10 = vector.shape_cast %9 : vector<2x16x64xf32> to vector<32x64xf32>
    %c1_17 = arith.constant 1 : index
    %c0_18 = arith.constant 0 : index
    %c0_19 = arith.constant 0 : index
    %11 = vector.load %arg2[%c1_17, %c0_18, %c0_19] : memref<3x64x128xf32, #tpu.memory_space<vmem>>, vector<1x64x128xf32>
    %12 = vector.shape_cast %11 : vector<1x64x128xf32> to vector<64x128xf32>
    %cst_20 = arith.constant dense<0.000000e+00> : vector<32x128xf32>
    %13 = tpu.matmul %10, %12, %cst_20 {dimension_numbers = #tpu.dot_dimension_numbers<[1], [0], [0], [1], [0, 0, 1, 1], [], []>} : vector<32x64xf32>, vector<64x128xf32>, vector<32x128xf32> -> vector<32x128xf32>
    %14 = arith.addf %8, %13 : vector<32x128xf32>
    %c0_21 = arith.constant 0 : index
    %c2 = arith.constant 2 : index
    %c0_22 = arith.constant 0 : index
    %15 = vector.load %arg8[%c0_21, %c2, %c0_22] : memref<2x18x64xf32, #tpu.memory_space<vmem>>, vector<2x16x64xf32>
    %16 = vector.shape_cast %15 : vector<2x16x64xf32> to vector<32x64xf32>
    %c2_23 = arith.constant 2 : index
    %c0_24 = arith.constant 0 : index
    %c0_25 = arith.constant 0 : index
    %17 = vector.load %arg2[%c2_23, %c0_24, %c0_25] : memref<3x64x128xf32, #tpu.memory_space<vmem>>, vector<1x64x128xf32>
    %18 = vector.shape_cast %17 : vector<1x64x128xf32> to vector<64x128xf32>
    %cst_26 = arith.constant dense<0.000000e+00> : vector<32x128xf32>
    %19 = tpu.matmul %16, %18, %cst_26 {dimension_numbers = #tpu.dot_dimension_numbers<[1], [0], [0], [1], [0, 0, 1, 1], [], []>} : vector<32x64xf32>, vector<64x128xf32>, vector<32x128xf32> -> vector<32x128xf32>
    %20 = arith.addf %14, %19 : vector<32x128xf32>
    %cst_27 = arith.constant dense<0.000000e+00> : vector<128xf32>
    %21 = vector.multi_reduction <add>, %20, %cst_27 [0] : vector<32x128xf32> to vector<128xf32>
    %22 = vector.shape_cast %21 : vector<128xf32> to vector<1x128xf32>
    %c0_28 = arith.constant 0 : index
    %c0_29 = arith.constant 0 : index
    %23 = vector.load %arg3[%c0_28, %c0_29] : memref<128x8xf32, #tpu.memory_space<vmem>>, vector<128x8xf32>
    %cst_30 = arith.constant dense<0.000000e+00> : vector<1x8xf32>
    %24 = tpu.matmul %22, %23, %cst_30 {dimension_numbers = #tpu.dot_dimension_numbers<[1], [0], [0], [1], [0, 0, 1, 1], [], []>} : vector<1x128xf32>, vector<128x8xf32>, vector<1x8xf32> -> vector<1x8xf32>
    %cst_31 = arith.constant 0.001953125 : f32
    %25 = vector.broadcast %cst_31 : f32 to vector<1x8xf32>
    %26 = arith.mulf %24, %25 : vector<1x8xf32>
    %c0_32 = arith.constant 0 : index
    %c0_33 = arith.constant 0 : index
    %27 = vector.load %arg4[%c0_32, %c0_33] : memref<8x128xf32, #tpu.memory_space<vmem>>, vector<8x128xf32>
    %cst_34 = arith.constant dense<0.000000e+00> : vector<1x128xf32>
    %28 = tpu.matmul %26, %27, %cst_34 {dimension_numbers = #tpu.dot_dimension_numbers<[1], [0], [0], [1], [0, 0, 1, 1], [], []>} : vector<1x8xf32>, vector<8x128xf32>, vector<1x128xf32> -> vector<1x128xf32>
    %29 = vector.broadcast %28 : vector<1x128xf32> to vector<32x128xf32>
    %30 = arith.subf %20, %29 : vector<32x128xf32>
    %31 = arith.mulf %30, %30 : vector<32x128xf32>
    %cst_35 = arith.constant dense<0.000000e+00> : vector<128xf32>
    %32 = vector.multi_reduction <add>, %31, %cst_35 [0] : vector<32x128xf32> to vector<128xf32>
    %33 = vector.shape_cast %32 : vector<128xf32> to vector<1x128xf32>
    %c0_36 = arith.constant 0 : index
    %c0_37 = arith.constant 0 : index
    %34 = vector.load %arg3[%c0_36, %c0_37] : memref<128x8xf32, #tpu.memory_space<vmem>>, vector<128x8xf32>
    %cst_38 = arith.constant dense<0.000000e+00> : vector<1x8xf32>
    %35 = tpu.matmul %33, %34, %cst_38 {dimension_numbers = #tpu.dot_dimension_numbers<[1], [0], [0], [1], [0, 0, 1, 1], [], []>} : vector<1x128xf32>, vector<128x8xf32>, vector<1x8xf32> -> vector<1x8xf32>
    %cst_39 = arith.constant 0.001953125 : f32
    %36 = vector.broadcast %cst_39 : f32 to vector<1x8xf32>
    %37 = arith.mulf %35, %36 : vector<1x8xf32>
    %c0_40 = arith.constant 0 : index
    %c0_41 = arith.constant 0 : index
    %38 = vector.load %arg5[%c0_40, %c0_41] : memref<1x8xf32, #tpu.memory_space<vmem>>, vector<1x8xf32>
    %cst_42 = arith.constant 9.99999974E-6 : f32
    %39 = vector.broadcast %cst_42 : f32 to vector<1x8xf32>
    %40 = arith.addf %37, %39 : vector<1x8xf32>
    %41 = math.rsqrt %40 : vector<1x8xf32>
    %42 = arith.mulf %38, %41 : vector<1x8xf32>
    %c0_43 = arith.constant 0 : index
    %c0_44 = arith.constant 0 : index
    %43 = vector.load %arg4[%c0_43, %c0_44] : memref<8x128xf32, #tpu.memory_space<vmem>>, vector<8x128xf32>
    %cst_45 = arith.constant dense<0.000000e+00> : vector<1x128xf32>
    %44 = tpu.matmul %42, %43, %cst_45 {dimension_numbers = #tpu.dot_dimension_numbers<[1], [0], [0], [1], [0, 0, 1, 1], [], []>} : vector<1x8xf32>, vector<8x128xf32>, vector<1x128xf32> -> vector<1x128xf32>
    %45 = vector.broadcast %44 : vector<1x128xf32> to vector<32x128xf32>
    %46 = arith.mulf %30, %45 : vector<32x128xf32>
    %c0_46 = arith.constant 0 : index
    %c0_47 = arith.constant 0 : index
    %47 = vector.load %arg6[%c0_46, %c0_47] : memref<1x128xf32, #tpu.memory_space<vmem>>, vector<1x128xf32>
    %48 = vector.broadcast %47 : vector<1x128xf32> to vector<32x128xf32>
    %49 = arith.addf %46, %48 : vector<32x128xf32>
    %c0_48 = arith.constant 0 : index
    %c0_49 = arith.constant 0 : index
    %50 = vector.load %arg7[%c0_48, %c0_49] : memref<32x128xf32, #tpu.memory_space<vmem>>, vector<32x128xf32>
    tpu.vector_store %arg7[%c0_48, %c0_49], %49 {strides = array<i32>} : memref<32x128xf32, #tpu.memory_space<vmem>>, vector<32x128xf32>,
    return
  }
  func.func @transform_0(%arg0: i32) -> (i32, i32, i32) {
    %c0_i32 = arith.constant 0 : i32
    %c0_i32_0 = arith.constant 0 : i32
    %c0_i32_1 = arith.constant 0 : i32
    %c0_i32_2 = arith.constant 0 : i32
    return %c0_i32, %c0_i32_0, %c0_i32_1 : i32, i32, i32
  }
  func.func @transform_1(%arg0: i32) -> (i32, i32, i32) {
    %c0_i32 = arith.constant 0 : i32
    %c0_i32_0 = arith.constant 0 : i32
    %c0_i32_1 = arith.constant 0 : i32
    %c0_i32_2 = arith.constant 0 : i32
    return %c0_i32, %c0_i32_0, %c0_i32_1 : i32, i32, i32
  }
  func.func @transform_2(%arg0: i32) -> (i32, i32) {
    %c0_i32 = arith.constant 0 : i32
    %c0_i32_0 = arith.constant 0 : i32
    %c0_i32_1 = arith.constant 0 : i32
    return %c0_i32, %c0_i32_0 : i32, i32
  }
  func.func @transform_3(%arg0: i32) -> (i32, i32) {
    %c0_i32 = arith.constant 0 : i32
    %c0_i32_0 = arith.constant 0 : i32
    %c0_i32_1 = arith.constant 0 : i32
    return %c0_i32, %c0_i32_0 : i32, i32
  }
  func.func @transform_4(%arg0: i32) -> (i32, i32) {
    %c0_i32 = arith.constant 0 : i32
    %c0_i32_0 = arith.constant 0 : i32
    %c0_i32_1 = arith.constant 0 : i32
    return %c0_i32, %c0_i32_0 : i32, i32
  }
  func.func @transform_5(%arg0: i32) -> (i32, i32) {
    %c0_i32 = arith.constant 0 : i32
    %c0_i32_0 = arith.constant 0 : i32
    %c0_i32_1 = arith.constant 0 : i32
    return %c0_i32, %c0_i32_0 : i32, i32
  }
  func.func @transform_6(%arg0: i32) -> (i32, i32) {
    %c0_i32 = arith.constant 0 : i32
    %c0_i32_0 = arith.constant 0 : i32
    %c0_i32_1 = arith.constant 0 : i32
    return %c0_i32, %c0_i32_0 : i32, i32
  }
}

</mosaic_0001>

<bundles_post_ra>
// kernel: tpu_custom_call.1
= control target key start
LH: loop header
LB: loop body
LE: loop exit
PB: predicated region body
PF: predicated region fallthrough
CT: control target
= control target key end

     0   :  { %11 = vsyncpa [#allocation4], 0  ;;  %s620_s0 = inlined_call_operand.vmem [shape: f32[2,16,64], index: 0, kind: input, shape index: {}]   ;;  %s621_s1 = inlined_call_operand.hbm [shape: f32[3,64,128], index: 1, kind: input, shape index: {}]   ;;  %s622_s2 = inlined_call_operand.vmem [shape: f32[128,8], index: 2, kind: input, shape index: {}]   ;;  %s623_s3 = inlined_call_operand.vmem [shape: f32[8,128], index: 3, kind: input, shape index: {}]   ;;  %s624_s4 = inlined_call_operand.vmem [shape: f32[1,8], index: 4, kind: input, shape index: {}]   ;;  %s625_s5 = inlined_call_operand.vmem [shape: f32[1,128], index: 5, kind: input, shape index: {}]   ;;  %s626_s6 = inlined_call_operand.hbm [shape: f32[32,128], index: 6, kind: output, shape index: {}]  }
   0x1   :  { %12 = vsyncpa [#allocation5], 0  ;;  %s19_s23 = sshll.u32 %s621_s1, 4  ;;  %s477_s24 = smov [#allocation3]   ;;  %s20_s23 = int_to_ptr.hbm [resolvable:$true] %s19_s23 }
   0x2   :  { %s21_s25 = sshll.u32 %s477_s24, 4  ;;  %s478_s26 = smov 128   ;;  %s22_s25 = int_to_ptr.vmem [resolvable:$true] %s21_s25 }
   0x3   :  { %s479_s27 = smov 8  }
   0x4   :  { %27 = dma.hbm_to_vmem [thread:$0]  %s20_s23, 3072, %s22_s25, [#allocation4], %s478_s26, %s478_s26, %s479_s27  }
   0x5   :  { %473 = dma.done.wait [#allocation4], 3072  }
   0x6   :  { %474 = vsyncadd [#allocation4], 4294964224  ;;  %vm40_vm0 = vcmask 523264   ;;  %vm43_vm1 = vcmask 517120   ;;  %v480_v0 = vmov 0.0   ;;  %v175_v1 = vld [vmem:[#allocation3 + $0xb8] sm:$0xff] }
   0x7   :  { %41 = vst.msk [vmem:[#allocation2] sm:$0xff] %vm40_vm0, %v480_v0  ;;  %v174_v2 = vld [vmem:[#allocation3 + $0xb0] sm:$0xff]  ;;  %v80_v3 = vld [vmem:[#allocation3 + $0x78] sm:$0xff]  ;;  %196 = vmatpush.msra.mxu2 %v175_v1  ;;  %v173_v6 = vld [vmem:[#allocation3 + $0xa8] sm:$0xff]  ;;  %vm268_vm2 = vcmask 64512   ;;  %s481_s22 = smov [#allocation6]  }
   0x8   :  { %42 = vst.msk [vmem:[#allocation2 + $0x8] sm:$0xff] %vm40_vm0, %v480_v0  ;;  %101 = vmatpush.msra.mxu0 %v80_v3  ;;  %v67_v4 = vld [vmem:[#allocation3 + $0x38] sm:$0xff]  ;;  %v79_v5 = vld [vmem:[#allocation3 + $0x70] sm:$0xff]  ;;  %v78_v8 = vld [vmem:[#allocation3 + $0x68] sm:$0xff]  ;;  %s390_s25 = sshll.u32 %s626_s6, 4  ;;  %s391_s25 = int_to_ptr.hbm [resolvable:$true] %s390_s25 }
   0x9   :  { %44 = vst.msk [vmem:[#allocation2 + $0x10] sm:$0x3] %vm43_vm1, %v480_v0  ;;  %142 = vmatpush.msra.mxu1 %v67_v4  ;;  %v66_v7 = vld [vmem:[#allocation3 + $0x30] sm:$0xff]  ;;  %197 = vmatpush.msra.mxu2 %v174_v2  ;;  %v65_v9 = vld [vmem:[#allocation3 + $0x28] sm:$0xff]  ;;  %v172_v10 = vld [vmem:[#allocation3 + $0xa0] sm:$0xff] }
   0xa   :  { %45 = vst.msk [vmem:[#allocation2 + $0x18] sm:$0xff] %vm40_vm0, %v480_v0  ;;  %102 = vmatpush.msra.mxu0 %v79_v5  ;;  %v77_v11 = vld [vmem:[#allocation3 + $0x60] sm:$0xff]  ;;  %v171_v13 = vld [vmem:[#allocation3 + $0x98] sm:$0xff]  ;;  %v48_v15 = vld [vmem:[%s620_s0] sm:$0xff] }
   0xb   :  { %46 = vst.msk [vmem:[#allocation2 + $0x20] sm:$0xff] %vm40_vm0, %v480_v0  ;;  %143 = vmatpush.msra.mxu1 %v66_v7  ;;  %198 = vmatpush.msra.mxu2 %v173_v6  ;;  %v64_v12 = vld [vmem:[#allocation3 + $0x20] sm:$0xff]  ;;  %v76_v14 = vld [vmem:[#allocation3 + $0x58] sm:$0xff]  ;;  %v170_v18 = vld [vmem:[#allocation3 + $0x90] sm:$0xff] }
   0xc   :  { %47 = vst.msk [vmem:[#allocation2 + $0x28] sm:$0x3] %vm43_vm1, %v480_v0  ;;  %103 = vmatpush.msra.mxu0 %v78_v8  ;;  %v63_v16 = vld [vmem:[#allocation3 + $0x18] sm:$0xff]  ;;  %v75_v19 = vld [vmem:[#allocation3 + $0x50] sm:$0xff]  ;;  %v50_v20 = vld [vmem:[%s620_s0 + $0x10] sm:$0xff] }
   0xd   :  { %144 = vmatpush.msra.mxu1 %v65_v9  ;;  %199 = vmatpush.msra.mxu2 %v172_v10  ;;  %v49_v17 = vld [vmem:[%s620_s0 + $0x8] sm:$0xff]  ;;  %52 = vst.msk [vmem:[#allocation2 + $0x1] sm:$0xff] %vm40_vm0, %v48_v15  ;;  %v62_v21 = vld [vmem:[#allocation3 + $0x10] sm:$0xff]  ;;  %v51_v22 = vld [vmem:[%s620_s0 + $0x18] sm:$0xff] }
   0xe   :  { %104 = vmatpush.msra.mxu0 %v77_v11  ;;  %53 = vst.msk [vmem:[#allocation2 + $0x9] sm:$0xff] %vm40_vm0, %v49_v17  ;;  %v169_v23 = vld [vmem:[#allocation3 + $0x88] sm:$0xff]  ;;  %v168_v26 = vld [vmem:[#allocation3 + $0x80] sm:$0xff]  ;;  %v243_v43 = vld [vmem:[%s622_s2 + $0x68] sm:$0xff] }
   0xf   :  { %145 = vmatpush.msra.mxu1 %v64_v12  ;;  %200 = vmatpush.msra.mxu2 %v171_v13  ;;  %54 = vst.msk [vmem:[#allocation2 + $0x19] sm:$0xff] %vm40_vm0, %v50_v20  ;;  %v74_v24 = vld [vmem:[#allocation3 + $0x48] sm:$0xff]  ;;  %v73_v27 = vld [vmem:[#allocation3 + $0x40] sm:$0xff]  ;;  %v242_v44 = vld [vmem:[%s622_s2 + $0x60] sm:$0xff] }
  0x10   :  { %105 = vmatpush.msra.mxu0 %v76_v14  ;;  %55 = vst.msk [vmem:[#allocation2 + $0x21] sm:$0xff] %vm40_vm0, %v51_v22  ;;  %v61_v25 = vld [vmem:[#allocation3 + $0x8] sm:$0xff]  ;;  %v60_v28 = vld [vmem:[#allocation3] sm:$0xff]  ;;  %v239_v47 = vld [vmem:[%s622_s2 + $0x48] sm:$0xff] }
  0x11   :  { %146 = vmatpush.msra.mxu1 %v63_v16  ;;  %201 = vmatpush.msra.mxu2 %v170_v18  ;;  %v245_v41 = vld [vmem:[%s622_s2 + $0x78] sm:$0xff]  ;;  %v244_v42 = vld [vmem:[%s622_s2 + $0x70] sm:$0xff]  ;;  %v238_v48 = vld [vmem:[%s622_s2 + $0x40] sm:$0xff] }
  0x12   :  { %106 = vmatpush.msra.mxu0 %v75_v19  ;;  %246 = vmatpush.msra.mxu3 %v245_v41  ;;  %v241_v45 = vld [vmem:[%s622_s2 + $0x58] sm:$0xff]  ;;  %v240_v46 = vld [vmem:[%s622_s2 + $0x50] sm:$0xff]  ;;  %v235_v53 = vld [vmem:[%s622_s2 + $0x28] sm:$0xff] }
  0x13   :  { %147 = vmatpush.msra.mxu1 %v62_v21  ;;  %202 = vmatpush.msra.mxu2 %v169_v23  ;;  %v237_v49 = vld [vmem:[%s622_s2 + $0x38] sm:$0xff]  ;;  %v236_v52 = vld [vmem:[%s622_s2 + $0x30] sm:$0xff]  ;;  %v234_v54 = vld [vmem:[%s622_s2 + $0x20] sm:$0xff] }
  0x14   :  { %107 = vmatpush.msra.mxu0 %v74_v24  ;;  %v68_v29 = vld [vmem:[#allocation2 + $0x1] sm:$0xff]  ;;  %247 = vmatpush.msra.mxu3 %v244_v42  ;;  %v233_v55 = vld [vmem:[%s622_s2 + $0x18] sm:$0xff]  ;;  %v232_v57 = vld [vmem:[%s622_s2 + $0x10] sm:$0xff] }
  0x15   :  { %148 = vmatpush.msra.mxu1 %v61_v25  ;;  %v56_v30 = vld [vmem:[#allocation2] sm:$0xff]  ;;  %203 = vmatpush.msra.mxu2 %v168_v26  ;;  %v164_v32 = vld [vmem:[#allocation2 + $0xa] sm:$0xff] }
  0x16   :  { %v163_v31 = vld [vmem:[#allocation2 + $0x2] sm:$0xff]  ;;  %108 = vmatpush.msra.mxu0 %v73_v27  ;;  %v70_v36 = vld [vmem:[#allocation2 + $0x19] sm:$0xff]  ;;  %248 = vmatpush.msra.mxu3 %v243_v43 }
  0x17   :  { %411 = vmatmul.msk.f32.vlgmr.msra.gmra.mxu2 %vm40_vm0, %v163_v31  ;;  %149 = vmatpush.msra.mxu1 %v60_v28  ;;  %v69_v33 = vld [vmem:[#allocation2 + $0x9] sm:$0xff]  ;;  %v165_v35 = vld [vmem:[#allocation2 + $0x1a] sm:$0xff] }
  0x18   :  { %403 = vmatmul.msk.f32.vlgmr.msra.gmra.mxu0 %vm40_vm0, %v68_v29  ;;  %407 = vmatmul.msk.f32.vlgmr.msra.gmra.mxu1 %vm40_vm0, %v56_v30  ;;  %v57_v34 = vld [vmem:[#allocation2 + $0x8] sm:$0xff]  ;;  %v58_v37 = vld [vmem:[#allocation2 + $0x18] sm:$0xff]  ;;  %v59_v40 = vld [vmem:[#allocation2 + $0x20] sm:$0xff] }
  0x19   :  { %v166_v38 = vld [vmem:[#allocation2 + $0x22] sm:$0xff]  ;;  %310 = vmatpush.msrb.mxu0 %v245_v41  ;;  %249 = vmatpush.msra.mxu3 %v242_v44 }
  0x1a   :  { %v71_v39 = vld [vmem:[#allocation2 + $0x21] sm:$0xff] }
  0x1b   :  { %311 = vmatpush.msrb.mxu0 %v244_v42  ;;  %250 = vmatpush.msra.mxu3 %v241_v45  ;;  %v231_v60 = vld [vmem:[%s622_s2 + $0x8] sm:$0xff]  ;;  %v230_v61 = vld [vmem:[%s622_s2] sm:$0xff] }
  0x1c   :  { %v267_v63 = vld [vmem:[%s623_s3] sm:$0xff] }
  0x1d   :  { %312 = vmatpush.msrb.mxu0 %v243_v43  ;;  %251 = vmatpush.msra.mxu3 %v240_v46 }
  0x1e   :  { %362 = vmatpush.msrb.mxu1 %v267_v63 }
  0x1f   :  { %412 = vmatmul.msk.f32.gmra.mxu2 %vm40_vm0, %v164_v32  ;;  %313 = vmatpush.msrb.mxu0 %v242_v44 }
  0x20   :  { %404 = vmatmul.msk.f32.gmra.mxu0 %vm40_vm0, %v69_v33  ;;  %408 = vmatmul.msk.f32.gmra.mxu1 %vm40_vm0, %v57_v34 }
  0x21   :  { %314 = vmatpush.msrb.mxu0 %v241_v45  ;;  %252 = vmatpush.msra.mxu3 %v239_v47 }
  0x23   :  { %315 = vmatpush.msrb.mxu0 %v240_v46  ;;  %253 = vmatpush.msra.mxu3 %v238_v48 }
  0x25   :  { %316 = vmatpush.msrb.mxu0 %v239_v47  ;;  %254 = vmatpush.msra.mxu3 %v237_v49 }
  0x27   :  { %413 = vmatmul.msk.f32.gmra.mxu2 %vm40_vm0, %v165_v35  ;;  %317 = vmatpush.msrb.mxu0 %v238_v48 }
  0x28   :  { %405 = vmatmul.msk.f32.gmra.mxu0 %vm40_vm0, %v70_v36  ;;  %409 = vmatmul.msk.f32.gmra.mxu1 %vm40_vm0, %v58_v37 }
  0x29   :  { %318 = vmatpush.msrb.mxu0 %v237_v49  ;;  %255 = vmatpush.msra.mxu3 %v236_v52 }
  0x2b   :  { %319 = vmatpush.msrb.mxu0 %v236_v52  ;;  %256 = vmatpush.msra.mxu3 %v235_v53 }
  0x2d   :  { %320 = vmatpush.msrb.mxu0 %v235_v53  ;;  %257 = vmatpush.msra.mxu3 %v234_v54  ;;  %v331_v53 = vld [vmem:[%s624_s4] sm:$0x1]  ;;  %s388_s4 = sshll.u32 %s481_s22, 4  ;;  %s389_s4 = int_to_ptr.vmem [resolvable:$true] %s388_s4 }
  0x2f   :  { %414 = vmatmul.msk.f32.gmra.mxu2 %vm40_vm0, %v166_v38  ;;  %321 = vmatpush.msrb.mxu0 %v234_v54 }
  0x30   :  { %406 = vmatmul.msk.f32.gmra.mxu0 %vm40_vm0, %v71_v39  ;;  %410 = vmatmul.msk.f32.gmra.mxu1 %vm40_vm0, %v59_v40 }
  0x31   :  { %258 = vmatpush.msra.mxu3 %v233_v55  ;;  %322 = vmatpush.msrb.mxu0 %v233_v55 }
  0x33   :  { %259 = vmatpush.msra.mxu3 %v232_v57  ;;  %323 = vmatpush.msrb.mxu0 %v232_v57 }
  0x35   :  { %260 = vmatpush.msra.mxu3 %v231_v60  ;;  %324 = vmatpush.msrb.mxu0 %v231_v60 }
  0x37   :  { %261 = vmatpush.msra.mxu3 %v230_v61  ;;  %325 = vmatpush.msrb.mxu0 %v230_v61 }
  0x39   :  { %287 = vmatpush.msrb.mxu3 %v267_v63 }
  0x95   :  { %v110_v50 = vpop.f32.mrf.mxu0  ;;  %v151_v51 = vpop.f32.mrf.mxu1 }
  0x96   :  { %v152_v4 = vadd.f32 %v151_v51, %v110_v50 }
  0x9a   :  { %v205_v56 = vpop.f32.mrf.mxu2 }
  0x9b   :  { %v217_v9 = vadd.f32 %v205_v56, %v152_v4 }
  0x9d   :  { %v113_v58 = vpop.f32.mrf.mxu0  ;;  %v154_v59 = vpop.f32.mrf.mxu1 }
  0x9e   :  { %v155_v2 = vadd.f32 %v154_v59, %v113_v58  ;;  %v422_v58 = vld [vmem:[%s625_s5] ss:$0 sm:$0xff] }
  0xa2   :  { %v208_v62 = vpop.f32.mrf.mxu2 }
  0xa3   :  { %v218_v6 = vadd.f32 %v208_v62, %v155_v2 }
  0xa5   :  { %v116_v0 = vpop.f32.mrf.mxu0  ;;  %v157_v1 = vpop.f32.mrf.mxu1  ;;  %v221_v12 = vadd.f32 %v218_v6, %v217_v9 }
  0xa6   :  { %v158_v5 = vadd.f32 %v157_v1, %v116_v0 }
  0xaa   :  { %v211_v3 = vpop.f32.mrf.mxu2 }
  0xab   :  { %v219_v10 = vadd.f32 %v211_v3, %v158_v5 }
  0xad   :  { %v119_v7 = vpop.f32.mrf.mxu0  ;;  %v160_v8 = vpop.f32.mrf.mxu1  ;;  %v222_v14 = vadd.f32 %v221_v12, %v219_v10 }
  0xae   :  { %v161_v11 = vadd.f32 %v160_v8, %v119_v7 }
  0xb2   :  { %v214_v13 = vpop.f32.mrf.mxu2 }
  0xb3   :  { %v220_v15 = vadd.f32 %v214_v13, %v161_v11 }
  0xb5   :  { %v223_v16 = vadd.f32 %v222_v14, %v220_v15 }
  0xb7   :  { %v224_v17 = vrot.slane %v223_v16, 4 }
  0xb9   :  { %v225_v18 = vadd.f32 %v224_v17, %v223_v16 }
  0xbb   :  { %v226_v19 = vrot.slane %v225_v18, 2 }
  0xbd   :  { %v227_v20 = vadd.f32 %v226_v19, %v225_v18 }
  0xbf   :  { %v228_v21 = vrot.slane %v227_v20, 1 }
  0xc1   :  { %v229_v22 = vadd.f32 %v228_v21, %v227_v20 }
  0xc3   :  { %262 = vmatmul.f32.vlgmr.msra.gmra.mxu3 %v229_v22 }
 0x146   :  { %v263_v23 = vpop.f32.mrf.mxu3 }
 0x147   :  { %v266_v24 = vmul.f32 0.001953125, %v263_v23 }
 0x149   :  { %415 = vmatmul.msk.f32.vlgmr.msrb.gmra.mxu3 %vm268_vm2, %v266_v24 }
 0x1cc   :  { %v289_v25 = vpop.f32.mrf.mxu3 }
 0x1cd   :  { %v292_v26 = vperm.slane %v289_v25, 0 }
 0x1cf   :  { %v293_v27 = vsub.f32 %v217_v9, %v292_v26  ;;  %v294_v28 = vsub.f32 %v218_v6, %v292_v26  ;;  %v295_v29 = vsub.f32 %v219_v10, %v292_v26  ;;  %v296_v30 = vsub.f32 %v220_v15, %v292_v26 }
 0x1d1   :  { %v297_v31 = vmul.f32 %v293_v27, %v293_v27  ;;  %v298_v32 = vmul.f32 %v294_v28, %v294_v28  ;;  %v299_v33 = vmul.f32 %v295_v29, %v295_v29  ;;  %v300_v35 = vmul.f32 %v296_v30, %v296_v30 }
 0x1d3   :  { %v301_v34 = vadd.f32 %v298_v32, %v297_v31 }
 0x1d5   :  { %v302_v36 = vadd.f32 %v301_v34, %v299_v33 }
 0x1d7   :  { %v303_v37 = vadd.f32 %v302_v36, %v300_v35 }
 0x1d9   :  { %v304_v38 = vrot.slane %v303_v37, 4 }
 0x1db   :  { %v305_v39 = vadd.f32 %v304_v38, %v303_v37 }
 0x1dd   :  { %v306_v40 = vrot.slane %v305_v39, 2 }
 0x1df   :  { %v307_v41 = vadd.f32 %v306_v40, %v305_v39 }
 0x1e1   :  { %v308_v42 = vrot.slane %v307_v41, 1 }
 0x1e3   :  { %v309_v43 = vadd.f32 %v308_v42, %v307_v41 }
 0x1e5   :  { %326 = vmatmul.f32.vlgmr.msrb.gmra.mxu0 %v309_v43 }
 0x262   :  { %v327_v44 = vpop.f32.mrf.mxu0 }
 0x263   :  { %v330_v45 = vmul.f32 0.001953125, %v327_v44 }
 0x265   :  { %v332_v46 = vadd.f32 1e-05, %v330_v45 }
 0x267   :  { %423 = vrsqrt.f32 %v332_v46  ;;  %vm339_vm4 = vweird.f32 %v332_v46 }
 0x26d   :  { %v424_v47 = vpop.eup %423 }
 0x26e   :  { %v334_v48 = vmul.f32 %v424_v47, %v332_v46  ;;  %vm340_vm3 = vweird.f32 %v424_v47 }
 0x26f   :  { %vm341_vm5 = vmor %vm339_vm4, %vm340_vm3 }
 0x270   :  { %v335_v49 = vmul.f32 %v424_v47, %v334_v48 }
 0x272   :  { %v336_v50 = vmul.f32 0.5, %v335_v49 }
 0x274   :  { %v337_v51 = vsub.f32 1.5, %v336_v50 }
 0x276   :  { %v338_v52 = vmul.f32 %v424_v47, %v337_v51 }
 0x278   :  { %v342_v54 = vsel %vm341_vm5, %v424_v47, %v338_v52 }
 0x279   :  { %v343_v55 = vmul.f32 %v342_v54, %v331_v53 }
 0x27b   :  { %416 = vmatmul.msk.f32.vlgmr.msrb.gmra.mxu1 %vm268_vm2, %v343_v55 }
 0x2f8   :  { %v364_v56 = vpop.f32.mrf.mxu1 }
 0x2f9   :  { %v367_v57 = vperm.slane %v364_v56, 0 }
 0x2fb   :  { %v368_v59 = vmul.f32 %v367_v57, %v293_v27  ;;  %v369_v60 = vmul.f32 %v367_v57, %v294_v28  ;;  %v370_v61 = vmul.f32 %v367_v57, %v295_v29  ;;  %v371_v62 = vmul.f32 %v367_v57, %v296_v30 }
 0x2fd   :  { %v376_v63 = vadd.f32 %v422_v58, %v368_v59  ;;  %v377_v0 = vadd.f32 %v422_v58, %v369_v60  ;;  %v378_v1 = vadd.f32 %v422_v58, %v370_v61  ;;  %v379_v2 = vadd.f32 %v422_v58, %v371_v62 }
 0x2ff   :  { %380 = vst [vmem:[#allocation6] sm:$0xff] %v376_v63 }
 0x300   :  { %381 = vst [vmem:[#allocation6 + $0x8] sm:$0xff] %v377_v0 }
 0x301   :  { %382 = vst [vmem:[#allocation6 + $0x10] sm:$0xff] %v378_v1 }
 0x302   :  { %383 = vst [vmem:[#allocation6 + $0x18] sm:$0xff] %v379_v2 }
 0x303   :  { %396 = dma.vmem_to_hbm [thread:$0]  %s389_s4, 512, %s391_s25, [#allocation5], %s478_s26, %s478_s26, %s479_s27  }
 0x304   :  { %475 = dma.done.wait [#allocation5], 512  }
 0x305   :  { %476 = vsyncadd [#allocation5], 4294966784 }
 0x306   :  { %401 = vsyncpa [#allocation4], 1 }
 0x307   :  { %402 = vsyncpa [#allocation5], 1 }

</bundles_post_ra>
